<compile_context>
chip_gen: v6e
topology: v6e:2x2x1
jax: 0.10.0
libtpu: 0.0.40
codegen_flags: <defaults>
</compile_context>

<pallas_src>
import functools

import jax
import jax.numpy as jnp
from jax.experimental import pallas as pl
from jax.experimental.pallas import tpu as pltpu


# ------------------------------ Pallas kernel -------------------------------

def _make_router_kernel(has0, has2):
    """Build the fused per-image kernel for the active set of branches."""

    def kernel(*refs):
        i = 0
        if has0:
            x_rows_ref, up_op_ref, bwt_ref, bias0_ref = refs[i:i + 4]
            i += 4
        x_flat_ref, w1_ref, bias1_ref = refs[i:i + 3]
        i += 3
        if has2:
            patches_ref, w2_ref, bias2_ref = refs[i:i + 3]
            i += 3
        outs = refs[i:]
        o = 0
        if has0:
            out0_ref = outs[o]; o += 1
        out1_ref = outs[o]; o += 1
        if has2:
            out2_ref = outs[o]; o += 1

        if has0:
            # Branch 0: conv(scale-folded) + separable bilinear x2 upsample.
            # (C2*2H, Cin*H) @ (Cin*H, W) -> (C2*2H, W) ; then @ (W, 2W).
            t = jnp.dot(up_op_ref[...], x_rows_ref[0],
                        preferred_element_type=jnp.float32)
            u = jnp.dot(t, bwt_ref[...], preferred_element_type=jnp.float32)
            out0_ref[0] = u + bias0_ref[...]

        # Branch 1: 1x1 conv + BN.  (C, Cin) @ (Cin, H*W) -> lane-dense store.
        y1 = jnp.dot(w1_ref[...], x_flat_ref[0],
                     preferred_element_type=jnp.float32)
        out1_ref[0] = y1 + bias1_ref[...]

        if has2:
            # Branch 2: 3x3 stride-2 conv + BN as (2C, 9Cin) @ (9Cin, Ho*Wo).
            y2 = jnp.dot(w2_ref[...], patches_ref[0],
                         preferred_element_type=jnp.float32)
            out2_ref[0] = y2 + bias2_ref[...]

    return kernel


# ------------------------------ glue helpers --------------------------------

def bilinear_upsample_matrix(n):
    """Exact PyTorch bilinear x2 (align_corners=False) as a (2n, n) matrix."""
    rows = []
    for o in range(2 * n):
        src = max((o + 0.5) * 0.5 - 0.5, 0.0)
        i0 = int(src)
        frac = src - i0
        i0c = min(i0, n - 1)
        i1c = min(i0 + 1, n - 1)
        row = [0.0] * n
        row[i0c] += 1.0 - frac
        row[i1c] += frac
        rows.append(row)
    return jnp.array(rows, dtype=jnp.float32)


def make_router_params(key, ind, inp, C, num_strides=4):
    eps = 1e-5

    def bn_fold(k, ch):
        k1, k2, k3, k4 = jax.random.split(k, 4)
        gamma = 1.0 + 0.1 * jax.random.normal(k1, (ch,), jnp.float32)
        beta = 0.1 * jax.random.normal(k2, (ch,), jnp.float32)
        mean = 0.1 * jax.random.normal(k3, (ch,), jnp.float32)
        var = jax.random.uniform(k4, (ch,), jnp.float32, minval=0.5, maxval=1.5)
        scale = gamma / jnp.sqrt(var + eps)
        bias = beta - mean * scale
        return scale, bias

    keys = jax.random.split(key, 6)
    params = {}
    if ind > 0:
        params["w0"] = 0.1 * jax.random.normal(keys[0], (C // 2, inp), jnp.float32)
        params["scale0"], params["bias0"] = bn_fold(keys[1], C // 2)
    params["w1"] = 0.1 * jax.random.normal(keys[2], (C, inp), jnp.float32)
    params["scale1"], params["bias1"] = bn_fold(keys[3], C)
    if ind < num_strides - 1:
        params["w2"] = 0.1 * jax.random.normal(keys[4], (2 * C, inp, 3, 3), jnp.float32)
        params["scale2"], params["bias2"] = bn_fold(keys[5], 2 * C)
    return params


def router_forward(params, x_nchw, ind, num_strides=4):
    N, Cin, H, W = x_nchw.shape
    x = x_nchw.astype(jnp.float32)
    has0 = ind > 0
    has2 = ind < num_strides - 1

    inputs, in_specs, out_shapes, out_specs = [], [], [], []

    if has0:
        C2 = params["w0"].shape[0]
        BH = bilinear_upsample_matrix(H)                    # (2H, H)
        BW = bilinear_upsample_matrix(W)                    # (2W, W)
        w0p = params["w0"] * params["scale0"][:, None]      # fold BN scale
        up_op = jnp.kron(w0p, BH)                           # (C2*2H, Cin*H)
        bwt = BW.T                                          # (W, 2W)
        bias0_rows = jnp.repeat(params["bias0"], 2 * H)[:, None]   # (C2*2H, 1)
        x_rows = x.reshape(N, Cin * H, W)                   # free NCHW view
        inputs += [x_rows, up_op, bwt, bias0_rows]
        in_specs += [
            pl.BlockSpec((1, Cin * H, W), lambda n: (n, 0, 0)),
            pl.BlockSpec((C2 * 2 * H, Cin * H), lambda n: (0, 0)),
            pl.BlockSpec((W, 2 * W), lambda n: (0, 0)),
            pl.BlockSpec((C2 * 2 * H, 1), lambda n: (0, 0)),
        ]
        out_shapes.append(jax.ShapeDtypeStruct((N, C2 * 2 * H, 2 * W), jnp.float32))
        out_specs.append(pl.BlockSpec((1, C2 * 2 * H, 2 * W), lambda n: (n, 0, 0)))

    C = params["w1"].shape[0]
    w1p = params["w1"] * params["scale1"][:, None]          # fold BN scale
    x_flat = x.reshape(N, Cin, H * W)                       # free NCHW view
    inputs += [x_flat, w1p, params["bias1"][:, None]]
    in_specs += [
        pl.BlockSpec((1, Cin, H * W), lambda n: (n, 0, 0)),
        pl.BlockSpec((C, Cin), lambda n: (0, 0)),
        pl.BlockSpec((C, 1), lambda n: (0, 0)),
    ]
    out_shapes.append(jax.ShapeDtypeStruct((N, C, H * W), jnp.float32))
    out_specs.append(pl.BlockSpec((1, C, H * W), lambda n: (n, 0, 0)))

    Ho = (H + 2 - 3) // 2 + 1
    Wo = (W + 2 - 3) // 2 + 1
    if has2:
        Cout2 = params["w2"].shape[0]
        # TODO(synk): im2col tap extraction stays in the XLA wrapper; Mosaic has
        # no clean lane-strided gather for the stride-2 taps.  The conv matmul
        # and BN run inside the fused kernel on the lane-dense layout.
        x_pad = jnp.pad(x, ((0, 0), (0, 0), (1, 1), (1, 1)))
        taps = []
        for dy in range(3):
            for dx in range(3):
                taps.append(x_pad[:, :, dy:dy + 2 * Ho - 1:2, dx:dx + 2 * Wo - 1:2])
        patches = jnp.concatenate(taps, axis=1).reshape(N, 9 * Cin, Ho * Wo)
        w2p = (jnp.transpose(params["w2"], (0, 2, 3, 1)).reshape(Cout2, 9 * Cin)
               * params["scale2"][:, None])                 # fold BN scale
        inputs += [patches, w2p, params["bias2"][:, None]]
        in_specs += [
            pl.BlockSpec((1, 9 * Cin, Ho * Wo), lambda n: (n, 0, 0)),
            pl.BlockSpec((Cout2, 9 * Cin), lambda n: (0, 0)),
            pl.BlockSpec((Cout2, 1), lambda n: (0, 0)),
        ]
        out_shapes.append(jax.ShapeDtypeStruct((N, Cout2, Ho * Wo), jnp.float32))
        out_specs.append(pl.BlockSpec((1, Cout2, Ho * Wo), lambda n: (n, 0, 0)))

    outs = pl.pallas_call(
        _make_router_kernel(has0, has2),
        out_shape=tuple(out_shapes),
        grid_spec=pltpu.PrefetchScalarGridSpec(
            num_scalar_prefetch=0,
            grid=(N,),
            in_specs=in_specs,
            out_specs=tuple(out_specs),
        ),
        compiler_params=pltpu.CompilerParams(dimension_semantics=("parallel",)),
    )(*inputs)

    outs = list(outs) if isinstance(outs, (tuple, list)) else [outs]
    h0 = h1 = h2 = None
    if has0:
        h0 = outs.pop(0).reshape(N, -1, 2 * H, 2 * W)       # NCHW, free reshape
    h1 = outs.pop(0).reshape(N, C, H, W)                    # NCHW, free reshape
    if has2:
        h2 = outs.pop(0).reshape(N, -1, Ho, Wo)             # NCHW, free reshape
    return h0, h1, h2


def router_reference(params, x_nchw, ind, num_strides=4):
    """Plain-JAX reference with the original op order, for validation."""
    N, Cin, H, W = x_nchw.shape
    x = x_nchw.astype(jnp.float32)
    h0 = None
    if ind > 0:
        BH = bilinear_upsample_matrix(H)
        BW = bilinear_upsample_matrix(W)
        up = jnp.einsum("uh,nchw->ncuw", BH, x)
        up = jnp.einsum("vw,ncuw->ncuv", BW, up)
        y0 = jnp.einsum("oc,ncuv->nouv", params["w0"], up)
        h0 = (y0 * params["scale0"][None, :, None, None]
              + params["bias0"][None, :, None, None])
    y1 = jnp.einsum("oc,nchw->nohw", params["w1"], x)
    h1 = (y1 * params["scale1"][None, :, None, None]
          + params["bias1"][None, :, None, None])
    h2 = None
    if ind < num_strides - 1:
        y2 = jax.lax.conv_general_dilated(
            x, params["w2"], window_strides=(2, 2), padding=((1, 1), (1, 1)),
            dimension_numbers=("NCHW", "OIHW", "NCHW"))
        h2 = (y2 * params["scale2"][None, :, None, None]
              + params["bias2"][None, :, None, None])
    return h0, h1, h2


if __name__ == "__main__":
    key = jax.random.PRNGKey(0)
    kx, kp = jax.random.split(key)

    N, inp, H, W = 2, 4, 16, 16
    C = 8
    ind, num_strides = 2, 4     # all three branches active

    x = jax.random.normal(kx, (N, inp, H, W), jnp.float32)
    params = make_router_params(kp, ind, inp, C, num_strides)

    fwd = jax.jit(functools.partial(router_forward, ind=ind, num_strides=num_strides))
    h0, h1, h2 = jax.block_until_ready(fwd(params, x))

    assert h0.shape == (N, C // 2, 2 * H, 2 * W)
    assert h1.shape == (N, C, H, W)
    assert h2.shape == (N, 2 * C, H // 2, W // 2)

    r0, r1, r2 = router_reference(params, x, ind, num_strides)
    for got, ref in ((h0, r0), (h1, r1), (h2, r2)):
        assert bool(jnp.all(jnp.isfinite(got)))
        err = float(jnp.max(jnp.abs(got - ref)))
        assert jnp.allclose(got, ref, rtol=2e-2, atol=2e-2), err

    print("KERNEL_OK")
</pallas_src>

<mosaic_0001>
module attributes {stable_mosaic.version = 11 : i64} {
  func.func @kernel(%arg0: i32, %arg1: memref<1x64x16xf32, #tpu.memory_space<vmem>>, %arg2: memref<128x64xf32, #tpu.memory_space<vmem>>, %arg3: memref<16x32xf32, #tpu.memory_space<vmem>>, %arg4: memref<128x1xf32, #tpu.memory_space<vmem>>, %arg5: memref<1x4x256xf32, #tpu.memory_space<vmem>>, %arg6: memref<8x4xf32, #tpu.memory_space<vmem>>, %arg7: memref<8x1xf32, #tpu.memory_space<vmem>>, %arg8: memref<1x36x64xf32, #tpu.memory_space<vmem>>, %arg9: memref<16x36xf32, #tpu.memory_space<vmem>>, %arg10: memref<16x1xf32, #tpu.memory_space<vmem>>, %arg11: memref<1x128x32xf32, #tpu.memory_space<vmem>>, %arg12: memref<1x8x256xf32, #tpu.memory_space<vmem>>, %arg13: memref<1x16x64xf32, #tpu.memory_space<vmem>>) attributes {dimension_semantics = [#tpu.dimension_semantics<parallel>], iteration_bounds = array<i64: 2>, scalar_prefetch = 0 : i64, scratch_operands = 0 : i64, tpu.core_type = #tpu.core_type<tc>, window_params = [{transform_indices = @transform_0, window_bounds = array<i64: 1, 64, 16>}, {pipeline_mode = #tpu.pipeline_mode<synchronous>, transform_indices = @transform_1, window_bounds = array<i64: 128, 64>}, {pipeline_mode = #tpu.pipeline_mode<synchronous>, transform_indices = @transform_2, window_bounds = array<i64: 16, 32>}, {pipeline_mode = #tpu.pipeline_mode<synchronous>, transform_indices = @transform_3, window_bounds = array<i64: 128, 1>}, {transform_indices = @transform_4, window_bounds = array<i64: 1, 4, 256>}, {pipeline_mode = #tpu.pipeline_mode<synchronous>, transform_indices = @transform_5, window_bounds = array<i64: 8, 4>}, {pipeline_mode = #tpu.pipeline_mode<synchronous>, transform_indices = @transform_6, window_bounds = array<i64: 8, 1>}, {transform_indices = @transform_7, window_bounds = array<i64: 1, 36, 64>}, {pipeline_mode = #tpu.pipeline_mode<synchronous>, transform_indices = @transform_8, window_bounds = array<i64: 16, 36>}, {pipeline_mode = #tpu.pipeline_mode<synchronous>, transform_indices = @transform_9, window_bounds = array<i64: 16, 1>}, {transform_indices = @transform_10, window_bounds = array<i64: 1, 128, 32>}, {transform_indices = @transform_11, window_bounds = array<i64: 1, 8, 256>}, {transform_indices = @transform_12, window_bounds = array<i64: 1, 16, 64>}]} {
    %c0 = arith.constant 0 : index
    %c0_0 = arith.constant 0 : index
    %0 = vector.load %arg2[%c0, %c0_0] : memref<128x64xf32, #tpu.memory_space<vmem>>, vector<128x64xf32>
    %c0_1 = arith.constant 0 : index
    %c0_2 = arith.constant 0 : index
    %c0_3 = arith.constant 0 : index
    %1 = vector.load %arg1[%c0_1, %c0_2, %c0_3] : memref<1x64x16xf32, #tpu.memory_space<vmem>>, vector<1x64x16xf32>
    %2 = vector.shape_cast %1 : vector<1x64x16xf32> to vector<64x16xf32>
    %cst = arith.constant dense<0.000000e+00> : vector<128x16xf32>
    %3 = tpu.matmul %0, %2, %cst {dimension_numbers = #tpu.dot_dimension_numbers<[1], [0], [0], [1], [0, 0, 1, 1], [], []>} : vector<128x64xf32>, vector<64x16xf32>, vector<128x16xf32> -> vector<128x16xf32>
    %c0_4 = arith.constant 0 : index
    %c0_5 = arith.constant 0 : index
    %4 = vector.load %arg3[%c0_4, %c0_5] : memref<16x32xf32, #tpu.memory_space<vmem>>, vector<16x32xf32>
    %cst_6 = arith.constant dense<0.000000e+00> : vector<128x32xf32>
    %5 = tpu.matmul %3, %4, %cst_6 {dimension_numbers = #tpu.dot_dimension_numbers<[1], [0], [0], [1], [0, 0, 1, 1], [], []>} : vector<128x16xf32>, vector<16x32xf32>, vector<128x32xf32> -> vector<128x32xf32>
    %c0_7 = arith.constant 0 : index
    %c0_8 = arith.constant 0 : index
    %6 = vector.load %arg4[%c0_7, %c0_8] : memref<128x1xf32, #tpu.memory_space<vmem>>, vector<128x1xf32>
    %7 = vector.broadcast %6 : vector<128x1xf32> to vector<128x32xf32>
    %8 = arith.addf %5, %7 : vector<128x32xf32>
    %c0_9 = arith.constant 0 : index
    %c0_10 = arith.constant 0 : index
    %c0_11 = arith.constant 0 : index
    %9 = vector.load %arg11[%c0_9, %c0_10, %c0_11] : memref<1x128x32xf32, #tpu.memory_space<vmem>>, vector<1x128x32xf32>
    %10 = vector.shape_cast %9 : vector<1x128x32xf32> to vector<128x32xf32>
    %11 = vector.shape_cast %8 : vector<128x32xf32> to vector<1x128x32xf32>
    tpu.vector_store %arg11[%c0_9, %c0_10, %c0_11], %11 {strides = array<i32>} : memref<1x128x32xf32, #tpu.memory_space<vmem>>, vector<1x128x32xf32>,
    %c0_12 = arith.constant 0 : index
    %c0_13 = arith.constant 0 : index
    %12 = vector.load %arg6[%c0_12, %c0_13] : memref<8x4xf32, #tpu.memory_space<vmem>>, vector<8x4xf32>
    %c0_14 = arith.constant 0 : index
    %c0_15 = arith.constant 0 : index
    %c0_16 = arith.constant 0 : index
    %13 = vector.load %arg5[%c0_14, %c0_15, %c0_16] : memref<1x4x256xf32, #tpu.memory_space<vmem>>, vector<1x4x256xf32>
    %14 = vector.shape_cast %13 : vector<1x4x256xf32> to vector<4x256xf32>
    %cst_17 = arith.constant dense<0.000000e+00> : vector<8x256xf32>
    %15 = tpu.matmul %12, %14, %cst_17 {dimension_numbers = #tpu.dot_dimension_numbers<[1], [0], [0], [1], [0, 0, 1, 1], [], []>} : vector<8x4xf32>, vector<4x256xf32>, vector<8x256xf32> -> vector<8x256xf32>
    %c0_18 = arith.constant 0 : index
    %c0_19 = arith.constant 0 : index
    %16 = vector.load %arg7[%c0_18, %c0_19] : memref<8x1xf32, #tpu.memory_space<vmem>>, vector<8x1xf32>
    %17 = vector.broadcast %16 : vector<8x1xf32> to vector<8x256xf32>
    %18 = arith.addf %15, %17 : vector<8x256xf32>
    %c0_20 = arith.constant 0 : index
    %c0_21 = arith.constant 0 : index
    %c0_22 = arith.constant 0 : index
    %19 = vector.load %arg12[%c0_20, %c0_21, %c0_22] : memref<1x8x256xf32, #tpu.memory_space<vmem>>, vector<1x8x256xf32>
    %20 = vector.shape_cast %19 : vector<1x8x256xf32> to vector<8x256xf32>
    %21 = vector.shape_cast %18 : vector<8x256xf32> to vector<1x8x256xf32>
    tpu.vector_store %arg12[%c0_20, %c0_21, %c0_22], %21 {strides = array<i32>} : memref<1x8x256xf32, #tpu.memory_space<vmem>>, vector<1x8x256xf32>,
    %c0_23 = arith.constant 0 : index
    %c0_24 = arith.constant 0 : index
    %22 = vector.load %arg9[%c0_23, %c0_24] : memref<16x36xf32, #tpu.memory_space<vmem>>, vector<16x36xf32>
    %c0_25 = arith.constant 0 : index
    %c0_26 = arith.constant 0 : index
    %c0_27 = arith.constant 0 : index
    %23 = vector.load %arg8[%c0_25, %c0_26, %c0_27] : memref<1x36x64xf32, #tpu.memory_space<vmem>>, vector<1x36x64xf32>
    %24 = vector.shape_cast %23 : vector<1x36x64xf32> to vector<36x64xf32>
    %cst_28 = arith.constant dense<0.000000e+00> : vector<16x64xf32>
    %25 = tpu.matmul %22, %24, %cst_28 {dimension_numbers = #tpu.dot_dimension_numbers<[1], [0], [0], [1], [0, 0, 1, 1], [], []>} : vector<16x36xf32>, vector<36x64xf32>, vector<16x64xf32> -> vector<16x64xf32>
    %c0_29 = arith.constant 0 : index
    %c0_30 = arith.constant 0 : index
    %26 = vector.load %arg10[%c0_29, %c0_30] : memref<16x1xf32, #tpu.memory_space<vmem>>, vector<16x1xf32>
    %27 = vector.broadcast %26 : vector<16x1xf32> to vector<16x64xf32>
    %28 = arith.addf %25, %27 : vector<16x64xf32>
    %c0_31 = arith.constant 0 : index
    %c0_32 = arith.constant 0 : index
    %c0_33 = arith.constant 0 : index
    %29 = vector.load %arg13[%c0_31, %c0_32, %c0_33] : memref<1x16x64xf32, #tpu.memory_space<vmem>>, vector<1x16x64xf32>
    %30 = vector.shape_cast %29 : vector<1x16x64xf32> to vector<16x64xf32>
    %31 = vector.shape_cast %28 : vector<16x64xf32> to vector<1x16x64xf32>
    tpu.vector_store %arg13[%c0_31, %c0_32, %c0_33], %31 {strides = array<i32>} : memref<1x16x64xf32, #tpu.memory_space<vmem>>, vector<1x16x64xf32>,
    return
  }
  func.func @transform_0(%arg0: i32) -> (i32, i32, i32) {
    %c0_i32 = arith.constant 0 : i32
    %c0_i32_0 = arith.constant 0 : i32
    %c0_i32_1 = arith.constant 0 : i32
    return %arg0, %c0_i32, %c0_i32_0 : i32, i32, i32
  }
  func.func @transform_1(%arg0: i32) -> (i32, i32) {
    %c0_i32 = arith.constant 0 : i32
    %c0_i32_0 = arith.constant 0 : i32
    %c0_i32_1 = arith.constant 0 : i32
    return %c0_i32, %c0_i32_0 : i32, i32
  }
  func.func @transform_2(%arg0: i32) -> (i32, i32) {
    %c0_i32 = arith.constant 0 : i32
    %c0_i32_0 = arith.constant 0 : i32
    %c0_i32_1 = arith.constant 0 : i32
    return %c0_i32, %c0_i32_0 : i32, i32
  }
  func.func @transform_3(%arg0: i32) -> (i32, i32) {
    %c0_i32 = arith.constant 0 : i32
    %c0_i32_0 = arith.constant 0 : i32
    %c0_i32_1 = arith.constant 0 : i32
    return %c0_i32, %c0_i32_0 : i32, i32
  }
  func.func @transform_4(%arg0: i32) -> (i32, i32, i32) {
    %c0_i32 = arith.constant 0 : i32
    %c0_i32_0 = arith.constant 0 : i32
    %c0_i32_1 = arith.constant 0 : i32
    return %arg0, %c0_i32, %c0_i32_0 : i32, i32, i32
  }
  func.func @transform_5(%arg0: i32) -> (i32, i32) {
    %c0_i32 = arith.constant 0 : i32
    %c0_i32_0 = arith.constant 0 : i32
    %c0_i32_1 = arith.constant 0 : i32
    return %c0_i32, %c0_i32_0 : i32, i32
  }
  func.func @transform_6(%arg0: i32) -> (i32, i32) {
    %c0_i32 = arith.constant 0 : i32
    %c0_i32_0 = arith.constant 0 : i32
    %c0_i32_1 = arith.constant 0 : i32
    return %c0_i32, %c0_i32_0 : i32, i32
  }
  func.func @transform_7(%arg0: i32) -> (i32, i32, i32) {
    %c0_i32 = arith.constant 0 : i32
    %c0_i32_0 = arith.constant 0 : i32
    %c0_i32_1 = arith.constant 0 : i32
    return %arg0, %c0_i32, %c0_i32_0 : i32, i32, i32
  }
  func.func @transform_8(%arg0: i32) -> (i32, i32) {
    %c0_i32 = arith.constant 0 : i32
    %c0_i32_0 = arith.constant 0 : i32
    %c0_i32_1 = arith.constant 0 : i32
    return %c0_i32, %c0_i32_0 : i32, i32
  }
  func.func @transform_9(%arg0: i32) -> (i32, i32) {
    %c0_i32 = arith.constant 0 : i32
    %c0_i32_0 = arith.constant 0 : i32
    %c0_i32_1 = arith.constant 0 : i32
    return %c0_i32, %c0_i32_0 : i32, i32
  }
  func.func @transform_10(%arg0: i32) -> (i32, i32, i32) {
    %c0_i32 = arith.constant 0 : i32
    %c0_i32_0 = arith.constant 0 : i32
    %c0_i32_1 = arith.constant 0 : i32
    return %arg0, %c0_i32, %c0_i32_0 : i32, i32, i32
  }
  func.func @transform_11(%arg0: i32) -> (i32, i32, i32) {
    %c0_i32 = arith.constant 0 : i32
    %c0_i32_0 = arith.constant 0 : i32
    %c0_i32_1 = arith.constant 0 : i32
    return %arg0, %c0_i32, %c0_i32_0 : i32, i32, i32
  }
  func.func @transform_12(%arg0: i32) -> (i32, i32, i32) {
    %c0_i32 = arith.constant 0 : i32
    %c0_i32_0 = arith.constant 0 : i32
    %c0_i32_1 = arith.constant 0 : i32
    return %arg0, %c0_i32, %c0_i32_0 : i32, i32, i32
  }
}

</mosaic_0001>

<bundles_post_ra>
// kernel: router_forward.1
= control target key start
LH: loop header
LB: loop body
LE: loop exit
PB: predicated region body
PF: predicated region fallthrough
CT: control target
= control target key end

     0   :  { %s2073_s0 = inlined_call_operand.vmem [shape: f32[2,64,16], index: 0, kind: input, shape index: {}]   ;;  %s2074_s1 = inlined_call_operand.vmem [shape: f32[128,64], index: 1, kind: input, shape index: {}]   ;;  %s2075_s2 = inlined_call_operand.vmem [shape: f32[16,32], index: 2, kind: input, shape index: {}]   ;;  %s2076_s3 = inlined_call_operand.vmem [shape: f32[128,1], index: 3, kind: input, shape index: {}]   ;;  %s2077_s4 = inlined_call_operand.vmem [shape: f32[2,4,256], index: 4, kind: input, shape index: {}]   ;;  %s2078_s5 = inlined_call_operand.vmem [shape: f32[8,4], index: 5, kind: input, shape index: {}]   ;;  %s2079_s6 = inlined_call_operand.vmem [shape: f32[8,1], index: 6, kind: input, shape index: {}]   ;;  %s2080_s7 = inlined_call_operand.vmem [shape: f32[2,36,64], index: 7, kind: input, shape index: {}]   ;;  %s2081_s8 = inlined_call_operand.vmem [shape: f32[16,36], index: 8, kind: input, shape index: {}]   ;;  %s2082_s9 = inlined_call_operand.vmem [shape: f32[16,1], index: 9, kind: input, shape index: {}]   ;;  %s2083_s10 = inlined_call_operand.hbm [shape: f32[2,128,32], index: 10, kind: output, shape index: {0}]   ;;  %s2084_s11 = inlined_call_operand.vmem [shape: f32[2,8,256], index: 11, kind: output, shape index: {1}]   ;;  %s2085_s12 = inlined_call_operand.vmem [shape: f32[2,16,64], index: 12, kind: output, shape index: {2}]  }
   0x1   :  { %2087 = sst [smem:[#allocation5_spill]] %s2073_s0 }
   0x2   :  { %2088 = sst [smem:[#allocation6_spill]] %s2074_s1 }
   0x3   :  { %2089 = sst [smem:[#allocation7_spill]] %s2075_s2 }
   0x4   :  { %2090 = sst [smem:[#allocation8_spill]] %s2076_s3 }
   0x5   :  { %18 = vsyncpa [#allocation3], 0 }
   0x6   :  { %20 = vsyncpa [#allocation3 + $0x1], 0  ;;  %s1739_s21 = smov 0   ;;  %s1741_s22 = smov 0  }
   0x7   :  { %s1743_s23 = smov 0   ;;  %s1745_s24 = smov 0  }
   0x8 LB: > { %s1760_s25 = sadd.s32 4294967295, %s1667_s24   ;;  %s1368_s26 = sadd.s32 4294967294, %s1667_s24   ;;  %s1667_s24 = sphi %s1745_s24, %s2101_s24   ;;  %s1663_s23 = sphi %s1743_s23, %s2100_s23   ;;  %s1659_s22 = sphi %s1741_s22, %s2099_s22   ;;  %s1655_s21 = sphi %s1739_s21, %s2098_s21  }
   0x9   : > { %s1764_s27 = sadd.s32 1, %s1667_s24   ;;  %s258_s28 = sadd.s32 1, %s1663_s23 }
   0xa   : > { %s255_s29 = ssub.s32 %s1667_s24, %s1764_s27  ;;  %p268_p0 = scmp.ne.s32.totalorder %s1663_s23, %s1659_s22 }
   0xb   : > { %p256_p1 = scmp.eq.s32.totalorder %s255_s29, 0  ;;  %p269_p2 = scmp.eq.s32.totalorder %s1760_s25, 1 }
   0xc   : > { %p274_p3 = scmp.ne.s32.totalorder %s1659_s22, %s1655_s21  ;;  %p275_p4 = scmp.eq.s32.totalorder %s1368_s26, 1 }
   0xd   : > { %s1775_s30 = scalar_select %p256_p1, %s1663_s23, %s258_s28  }
   0xe   : > { %p1777_p5 = por %p269_p2, %p268_p0  ;;  %p1781_p6 = por %p275_p4, %p274_p3 }
   0xf   : > { %p1371_p7 = scmp.ge.s32.totalorder %s1667_s24, 1  ;;  %p390_p8 = scmp.lt.s32.totalorder %s1667_s24, 3 }
  0x11   : > { %p391_p9 = pnand %p1371_p7, %p390_p8 }
  0x12   : > { %p452_p10 = scmp.lt.s32.totalorder (!%p391_p9), %s1760_s25, 1  ;;  %s2093_s1 = sld [smem:[#allocation6_spill]] (!%p391_p9) }
  0x13   : > { %394 = sbr.rel (%p391_p9) target bundleno = 485 (0x1e5), region = 60  ;;  %s2094_s0 = sld [smem:[#allocation5_spill]] (!%p391_p9) }
  0x14   : > { %s2095_s2 = sld [smem:[#allocation7_spill]] (!%p391_p9)  ;;  %s1671_s16 = smov (!%p391_p9), [#allocation2]  }
  0x15   : > { %s2096_s3 = sld [smem:[#allocation8_spill]] (!%p391_p9) }
  0x18   : > { %v477_v0 = vld [vmem:[%s2093_s1] sm:$0xff]  ;;  %vm501_vm0 = vcmask 523264   ;;  %s1793_s17 = scalar_select %p452_p10, %s1760_s25, 1  ;;  %v478_v10 = vld [vmem:[%s2093_s1 + $0x8] sm:$0xff]  ;;  %v479_v11 = vld [vmem:[%s2093_s1 + $0x10] sm:$0xff]  ;;  %vm1018_vm1 = vcmask 1043456  }
  0x19   : > { %1495 = vmatprep.mubr.msk.f32.mxu0 %vm501_vm0, %v477_v0  ;;  %v480_v12 = vld [vmem:[%s2093_s1 + $0x18] sm:$0xff]  ;;  %v481_v13 = vld [vmem:[%s2093_s1 + $0x20] sm:$0xff]  ;;  %v482_v14 = vld [vmem:[%s2093_s1 + $0x28] sm:$0xff]  ;;  %v1669_v28 = vmov 0   ;;  %vm793_vm2 = vcmask 130048   ;;  %vm1014_vm3 = vcmask 31744  }
  0x1a   : > { %s1425_s18 = sshll.u32 %s1793_s17, 6  ;;  %v696_v1 = vld [vmem:[%s2095_s2 + $0x8] sm:$0xff]  ;;  %v483_v15 = vld [vmem:[%s2093_s1 + $0x30] sm:$0xff]  ;;  %v484_v16 = vld [vmem:[%s2093_s1 + $0x38] sm:$0xff]  ;;  %s1426_s15 = sshll.u32 %s1793_s17, 3  ;;  %1604 = vset.pattern.permute.xlu0 %v1669_v28  ;;  %1605 = vset.pattern.permute.xlu1 %v1669_v28  ;;  %vm1115_vm4 = vcmask 293888  }
  0x1b   : > { %s456_s26 = scalar_lea.vmem %s2094_s0, %s1425_s18  ;;  %1519 = vmatprep.subr.mxu1 %v696_v1  ;;  %v485_v17 = vld [vmem:[%s2093_s1 + $0x40] sm:$0xff]  ;;  %v486_v18 = vld [vmem:[%s2093_s1 + $0x48] sm:$0xff]  ;;  %v487_v19 = vld [vmem:[%s2093_s1 + $0x50] sm:$0xff]  ;;  %s461_s19 = scalar_lea.vmem %s2077_s4, %s1426_s15  ;;  %vm987_vm5 = vcmask 261120  }
  0x1c   : > { %v500_v2 = vld [vmem:[%s456_s26 + $0x38] sm:$0xff]  ;;  %v499_v3 = vld [vmem:[%s456_s26 + $0x30] sm:$0xff]  ;;  %1520 = vmatpush3.msra.mxu1 %v696_v1  ;;  %v498_v4 = vld [vmem:[%s456_s26 + $0x28] sm:$0xff]  ;;  %v1670_v1 = vmov 0.0   ;;  %s2086_s29 = sshll.u32 %s1793_s17, 4 }
  0x1d   : > { %1479 = vmatprep.subr.mxu0 %v500_v2  ;;  %v497_v5 = vld [vmem:[%s456_s26 + $0x20] sm:$0xff]  ;;  %v496_v6 = vld [vmem:[%s456_s26 + $0x18] sm:$0xff]  ;;  %v495_v7 = vld [vmem:[%s456_s26 + $0x10] sm:$0xff] }
  0x1e   : > { %1480 = vmatpush3.msra.mxu0 %v500_v2  ;;  %v494_v8 = vld [vmem:[%s456_s26 + $0x8] sm:$0xff]  ;;  %v493_v9 = vld [vmem:[%s456_s26] sm:$0xff]  ;;  %v488_v20 = vld [vmem:[%s2093_s1 + $0x58] sm:$0xff] }
  0x1f   : > { %1481 = vmatprep.subr.mxu0 %v499_v3  ;;  %v489_v21 = vld [vmem:[%s2093_s1 + $0x60] sm:$0xff]  ;;  %v490_v22 = vld [vmem:[%s2093_s1 + $0x68] sm:$0xff]  ;;  %v491_v23 = vld [vmem:[%s2093_s1 + $0x70] sm:$0xff] }
  0x20   : > { %1482 = vmatpush3.msra.mxu0 %v499_v3  ;;  %v492_v24 = vld [vmem:[%s2093_s1 + $0x78] sm:$0xff]  ;;  %v695_v25 = vld [vmem:[%s2095_s2] sm:$0xff]  ;;  %v698_v30 = vld [vmem:[%s2096_s3 + $0x8] sm:$0xff]  ;;  %s1560_s1 = smul.u32 40, %s1793_s17  ;;  %s1611_s2 = sshll.u32 %s1671_s16, 4  ;;  %s1612_s2 = int_to_ptr.vmem [resolvable:$false] %s1611_s2 }
  0x21   : > { %1483 = vmatprep.subr.mxu0 %v498_v4  ;;  %1521 = vmatprep.subr.mxu1 %v695_v25  ;;  %v1005_v26 = vld [vmem:[%s461_s19] sm:$0xff]  ;;  %v699_v31 = vld [vmem:[%s2096_s3 + $0x10] sm:$0xff]  ;;  %v700_v32 = vld [vmem:[%s2096_s3 + $0x18] sm:$0xff] }
  0x22   : > { %1484 = vmatpush3.msra.mxu0 %v498_v4  ;;  %1522 = vmatpush3.msra.mxu1 %v695_v25  ;;  %v1013_v27 = vcombine.high %v1005_v26, %v1005_v26  ;;  %v697_v29 = vld [vmem:[%s2096_s3] sm:$0xff]  ;;  %v702_v34 = vld [vmem:[%s2096_s3 + $0x28] sm:$0xff]  ;;  %v703_v35 = vld [vmem:[%s2096_s3 + $0x30] sm:$0xff]  ;;  %s1931_s28 = scalar_lea.vmem %s2080_s7, %s1560_s1  ;;  %s435_s1 = sand.u32 1, %s1659_s22  }
  0x23   : > { %1485 = vmatprep.subr.mxu0 %v497_v5  ;;  %715 = vperm.xlu0 %1604, %v697_v29   ;;  %v701_v33 = vld [vmem:[%s2096_s3 + $0x20] sm:$0xff]  ;;  %v704_v36 = vld [vmem:[%s2096_s3 + $0x38] sm:$0xff]  ;;  %v706_v38 = vld [vmem:[%s2096_s3 + $0x48] sm:$0xff]  ;;  %s1372_s19 = sshll.u32 %s435_s1, 7 }
  0x24   : > { %1486 = vmatpush3.msra.mxu0 %v497_v5  ;;  %1414 = vmatprep.subr.msk.mxu1 %vm1018_vm1, %v1013_v27  ;;  %v705_v37 = vld [vmem:[%s2096_s3 + $0x40] sm:$0xff]  ;;  %v707_v39 = vld [vmem:[%s2096_s3 + $0x50] sm:$0xff]  ;;  %v708_v40 = vld [vmem:[%s2096_s3 + $0x58] sm:$0xff]  ;;  %s1971_s20 = scalar_lea.vmem [#allocation2], %s1372_s19  ;;  %s2018_s19 = scalar_lea.vmem %s2084_s11, %s2086_s29 }
  0x25   : > { %1487 = vmatprep.subr.mxu0 %v496_v6  ;;  %725 = vperm.xlu1 %1605, %v699_v31   ;;  %v709_v41 = vld [vmem:[%s2096_s3 + $0x60] sm:$0xff]  ;;  %v710_v42 = vld [vmem:[%s2096_s3 + $0x68] sm:$0xff]  ;;  %v711_v43 = vld [vmem:[%s2096_s3 + $0x70] sm:$0xff]  ;;  %s1226_s26 = sshll.u32 %s1971_s20, 4  ;;  %s2009_s26 = int_to_ptr.vmem [resolvable:$true] %s1226_s26 }
  0x26   : > { %1488 = vmatpush3.msra.mxu0 %v496_v6  ;;  %v712_v44 = vld [vmem:[%s2096_s3 + $0x78] sm:$0xff]  ;;  %v1006_v45 = vld [vmem:[%s2079_s6] sm:$0xff]  ;;  %v1104_v47 = vld [vmem:[%s2082_s9 + $0x8] sm:$0xff]  ;;  %s1607_s0 = scalar_lea.vmem %s2009_s26, 2048  ;;  %s1613_s3 = scalar_lea.vmem %s1612_s2, 4096 }
  0x27   : > { %1489 = vmatprep.subr.mxu0 %v495_v7  ;;  %720 = vperm.xlu0 %1604, %v698_v30   ;;  %v1103_v46 = vld [vmem:[%s2082_s9] sm:$0xff]  ;;  %v1101_v4 = vld [vmem:[%s1931_s28 + $0x18] sm:$0xff]  ;;  %v1100_v5 = vld [vmem:[%s1931_s28 + $0x10] sm:$0xff]  ;;  %p1608_p11 = scmp.ne.s32.totalorder %s2009_s26, %s1607_s0  ;;  %p1614_p0 = scmp.lt.s32.totalorder %s2009_s26, %s1612_s2 }
  0x28   : > { %1490 = vmatpush3.msra.mxu0 %v495_v7  ;;  %v1102_v50 = vld [vmem:[%s1931_s28 + $0x20] sm:$0xf]  ;;  %v1099_v6 = vld [vmem:[%s1931_s28 + $0x8] sm:$0xff]  ;;  %p1615_p1 = scmp.lt.s32.totalorder %s1613_s3, %s1607_s0 }
  0x29   : > { %1491 = vmatprep.subr.mxu0 %v494_v8  ;;  %730 = vperm.xlu1 %1605, %v700_v32   ;;  %v1004_v2 = vld [vmem:[%s2078_s5] sm:$0xff]  ;;  %p1609_p12 = pnand %p1608_p11, %p1777_p5 }
  0x2a   : > { %1492 = vmatpush3.msra.mxu0 %v494_v8  ;;  %v1096_v3 = vld [vmem:[%s2081_s8] sm:$0xff]  ;;  %v1097_v8 = vld [vmem:[%s2081_s8 + $0x8] sm:$0xff]  ;;  %p1616_p2 = por %p1615_p1, %p1614_p0 }
  0x2b   : > { %1493 = vmatprep.subr.mxu0 %v493_v9  ;;  %735 = vperm.xlu0 %1604, %v701_v33   ;;  %v1098_v7 = vld [vmem:[%s1931_s28] sm:$0xff]  ;;  %s1429_s28 = sshll.u32 %s1760_s25, 11  ;;  %p1610_p13 = pneg %p1609_p12 }
  0x2c   : > { %1494 = vmatpush3.msra.mxu0 %v493_v9  ;;  %s2007_s15 = scalar_lea.hbm %s2083_s10, %s1429_s28  ;;  %s2024_s28 = scalar_lea.sflag [#allocation3], %s435_s1 }
  0x2d   : > { %1496 = vmatmul.mubr.msk.f32.vlgmr.msra.gmra.mxu0 %vm501_vm0, %v478_v10  ;;  %740 = vperm.xlu1 %1605, %v702_v34   ;;  %p1617_p3 = pnand %p1616_p2, %p1610_p13 }
  0x2e   : > { %1498 = vmatprep.mubr.msk.f32.mxu0 %vm501_vm0, %v479_v11 }
  0x2f   : > { %745 = vperm.xlu0 %1604, %v703_v35  }
  0x31   : > { %1499 = vmatmul.mubr.msk.f32.gmra.mxu0 %vm501_vm0, %v480_v12  ;;  %750 = vperm.xlu1 %1605, %v704_v36  }
  0x32   : > { %1501 = vmatprep.mubr.msk.f32.mxu0 %vm501_vm0, %v481_v13 }
  0x33   : > { %755 = vperm.xlu0 %1604, %v705_v37  }
  0x35   : > { %1502 = vmatmul.mubr.msk.f32.gmra.mxu0 %vm501_vm0, %v482_v14  ;;  %760 = vperm.xlu1 %1605, %v706_v38  }
  0x36   : > { %1504 = vmatprep.mubr.msk.f32.mxu0 %vm501_vm0, %v483_v15 }
  0x37   : > { %765 = vperm.xlu0 %1604, %v707_v39  }
  0x39   : > { %1505 = vmatmul.mubr.msk.f32.gmra.mxu0 %vm501_vm0, %v484_v16  ;;  %770 = vperm.xlu1 %1605, %v708_v40  }
  0x3a   : > { %1507 = vmatprep.mubr.msk.f32.mxu0 %vm501_vm0, %v485_v17 }
  0x3b   : > { %775 = vperm.xlu0 %1604, %v709_v41  }
  0x3d   : > { %1508 = vmatmul.mubr.msk.f32.gmra.mxu0 %vm501_vm0, %v486_v18  ;;  %780 = vperm.xlu1 %1605, %v710_v42  }
  0x3e   : > { %1510 = vmatprep.mubr.msk.f32.mxu0 %vm501_vm0, %v487_v19 }
  0x3f   : > { %785 = vperm.xlu0 %1604, %v711_v43  }
  0x41   : > { %1511 = vmatmul.mubr.msk.f32.gmra.mxu0 %vm501_vm0, %v488_v20  ;;  %790 = vperm.xlu1 %1605, %v712_v44  }
  0x42   : > { %1513 = vmatprep.mubr.msk.f32.mxu0 %vm501_vm0, %v489_v21 }
  0x43   : > { %1009 = vperm.xlu0 %1604, %v1006_v45  }
  0x45   : > { %1514 = vmatmul.mubr.msk.f32.gmra.mxu0 %vm501_vm0, %v490_v22  ;;  %1107 = vperm.xlu1 %1605, %v1103_v46  }
  0x46   : > { %1516 = vmatprep.mubr.msk.f32.mxu0 %vm501_vm0, %v491_v23 }
  0x47   : > { %1112 = vperm.xlu0 %1604, %v1104_v47  }
  0x49   : > { %1517 = vmatmul.mubr.msk.f32.gmra.mxu0 %vm501_vm0, %v492_v24 }
  0x9e   : > { %v716_v9 = vpop.permute.xlu0 %715 }
  0xa0   : > { %v726_v10 = vpop.permute.xlu1 %725 }
  0xa2   : > { %v721_v11 = vpop.permute.xlu0 %720 }
  0xa4   : > { %v731_v12 = vpop.permute.xlu1 %730 }
  0xa6   : > { %v736_v13 = vpop.permute.xlu0 %735 }
  0xa8   : > { %v741_v14 = vpop.permute.xlu1 %740 }
  0xaa   : > { %v746_v17 = vpop.permute.xlu0 %745 }
  0xac   : > { %v751_v20 = vpop.permute.xlu1 %750 }
  0xae   : > { %v756_v25 = vpop.permute.xlu0 %755 }
  0xb0   : > { %v761_v28 = vpop.permute.xlu1 %760 }
  0xb2   : > { %v766_v33 = vpop.permute.xlu0 %765 }
  0xb4   : > { %v771_v36 = vpop.permute.xlu1 %770 }
  0xb6   : > { %v776_v41 = vpop.permute.xlu0 %775 }
  0xb8   : > { %v781_v44 = vpop.permute.xlu1 %780 }
  0xed   : > { %v1497_v48 = vpop.f32.mrf.mxu0 }
  0xef   : > { %v616_v49 = vpop.f32.mrf.mxu0 }
  0xf0   : > { %1523 = vmatprep.mubr.msk.f32.mxu1 %vm793_vm2, %v616_v49  ;;  %v786_v49 = vpop.permute.xlu0 %785 }
  0xf1   : > { %v1500_v51 = vpop.f32.mrf.mxu0  ;;  %1524 = vmatmul.mubr.msk.f32.vlgmr.msra.gmra.mxu1 %vm793_vm2, %v1497_v48 }
  0xf2   : > { %1415 = vmatpush1.msk.msra.mxu1 %vm1018_vm1, %v1005_v26 }
  0xf3   : > { %v626_v52 = vpop.f32.mrf.mxu0  ;;  %1547 = vmatprep.subr.msk.mxu1 %vm1018_vm1, %v1102_v50 }
  0xf4   : > { %1526 = vmatprep.mubr.msk.f32.mxu1 %vm793_vm2, %v626_v52  ;;  %v791_v52 = vpop.permute.xlu1 %790 }
  0xf5   : > { %v1503_v53 = vpop.f32.mrf.mxu0  ;;  %1527 = vmatmul.mubr.msk.f32.gmra.mxu1 %vm793_vm2, %v1500_v51 }
  0xf7   : > { %v636_v54 = vpop.f32.mrf.mxu0 }
  0xf8   : > { %1529 = vmatprep.mubr.msk.f32.mxu1 %vm793_vm2, %v636_v54 }
  0xf9   : > { %v1506_v55 = vpop.f32.mrf.mxu0  ;;  %1530 = vmatmul.mubr.msk.f32.gmra.mxu1 %vm793_vm2, %v1503_v53 }
  0xfb   : > { %v646_v56 = vpop.f32.mrf.mxu0 }
  0xfc   : > { %1532 = vmatprep.mubr.msk.f32.mxu1 %vm793_vm2, %v646_v56 }
  0xfd   : > { %v1509_v57 = vpop.f32.mrf.mxu0  ;;  %1533 = vmatmul.mubr.msk.f32.gmra.mxu1 %vm793_vm2, %v1506_v55 }
  0xff   : > { %v656_v58 = vpop.f32.mrf.mxu0 }
 0x100   : > { %1535 = vmatprep.mubr.msk.f32.mxu1 %vm793_vm2, %v656_v58 }
 0x101   : > { %v1512_v59 = vpop.f32.mrf.mxu0  ;;  %1536 = vmatmul.mubr.msk.f32.gmra.mxu1 %vm793_vm2, %v1509_v57  ;;  %v1010_v57 = vpop.permute.xlu0 %1009 }
 0x103   : > { %v666_v60 = vpop.f32.mrf.mxu0 }
 0x104   : > { %1538 = vmatprep.mubr.msk.f32.mxu1 %vm793_vm2, %v666_v60 }
 0x105   : > { %v1515_v61 = vpop.f32.mrf.mxu0  ;;  %1539 = vmatmul.mubr.msk.f32.gmra.mxu1 %vm793_vm2, %v1512_v59 }
 0x107   : > { %v676_v62 = vpop.f32.mrf.mxu0 }
 0x108   : > { %1541 = vmatprep.mubr.msk.f32.mxu1 %vm793_vm2, %v676_v62 }
 0x109   : > { %v1518_v63 = vpop.f32.mrf.mxu0  ;;  %1542 = vmatmul.mubr.msk.f32.gmra.mxu1 %vm793_vm2, %v1515_v61 }
 0x10b   : > { %v686_v0 = vpop.f32.mrf.mxu0 }
 0x10c   : > { %1544 = vmatprep.mubr.msk.f32.mxu1 %vm793_vm2, %v686_v0 }
 0x10d   : > { %1545 = vmatmul.mubr.msk.f32.gmra.mxu1 %vm793_vm2, %v1518_v63 }
 0x10e   : > { %1087 = vmatprep.mubr.f32.mxu1 %v1670_v1 }
 0x111   : > { %1416 = vmatmul.mubr.msk.f32.vlgmr.msra.gmra.mxu1 %vm1014_vm3, %v1004_v2 }
 0x112   : > { %1548 = vmatpush3.msk.msra.mxu1 %vm1018_vm1, %v1102_v50  ;;  %1557 = vmatprep.mubr.msk.f32.mxu1 %vm1115_vm4, %v1096_v3 }
 0x113   : > { %1549 = vmatprep.subr.mxu1 %v1101_v4 }
 0x114   : > { %1550 = vmatpush3.msra.mxu1 %v1101_v4 }
 0x115   : > { %1551 = vmatprep.subr.mxu1 %v1100_v5 }
 0x116   : > { %1552 = vmatpush3.msra.mxu1 %v1100_v5 }
 0x117   : > { %1553 = vmatprep.subr.mxu1 %v1099_v6 }
 0x118   : > { %1554 = vmatpush3.msra.mxu1 %v1099_v6 }
 0x119   : > { %1555 = vmatprep.subr.mxu1 %v1098_v7 }
 0x11a   : > { %1556 = vmatpush3.msra.mxu1 %v1098_v7 }
 0x11b   : > { %1558 = vmatmul.mubr.msk.f32.vlgmr.msra.gmra.mxu1 %vm1115_vm4, %v1097_v8 }
 0x1b1   : > { %v1525_v15 = vpop.f32.mrf.mxu1 }
 0x1b2   : > { %v914_v16 = vadd.f32 %v1525_v15, %v721_v11 }
 0x1b3   : > { %v908_v18 = vpop.f32.mrf.mxu1 }
 0x1b4   : > { %989 = vst.msk [vmem:[%s1971_s20 + $0x8] sm:$0xff] %vm987_vm5, %v914_v16  ;;  %v909_v19 = vadd.f32 %v908_v18, %v716_v9 }
 0x1b5   : > { %v1528_v21 = vpop.f32.mrf.mxu1 }
 0x1b6   : > { %988 = vst.msk [vmem:[%s1971_s20] sm:$0xff] %vm987_vm5, %v909_v19  ;;  %v924_v22 = vadd.f32 %v1528_v21, %v731_v12 }
 0x1b7   : > { %v918_v23 = vpop.f32.mrf.mxu1 }
 0x1b8   : > { %991 = vst.msk [vmem:[%s1971_s20 + $0x18] sm:$0xff] %vm987_vm5, %v924_v22  ;;  %v919_v24 = vadd.f32 %v918_v23, %v726_v10 }
 0x1b9   : > { %v1531_v26 = vpop.f32.mrf.mxu1 }
 0x1ba   : > { %990 = vst.msk [vmem:[%s1971_s20 + $0x10] sm:$0xff] %vm987_vm5, %v919_v24  ;;  %v934_v27 = vadd.f32 %v1531_v26, %v741_v14 }
 0x1bb   : > { %v928_v29 = vpop.f32.mrf.mxu1 }
 0x1bc   : > { %993 = vst.msk [vmem:[%s1971_s20 + $0x28] sm:$0xff] %vm987_vm5, %v934_v27  ;;  %v929_v30 = vadd.f32 %v928_v29, %v736_v13 }
 0x1bd   : > { %v1534_v31 = vpop.f32.mrf.mxu1 }
 0x1be   : > { %992 = vst.msk [vmem:[%s1971_s20 + $0x20] sm:$0xff] %vm987_vm5, %v929_v30  ;;  %v944_v32 = vadd.f32 %v1534_v31, %v751_v20 }
 0x1bf   : > { %v938_v34 = vpop.f32.mrf.mxu1 }
 0x1c0   : > { %995 = vst.msk [vmem:[%s1971_s20 + $0x38] sm:$0xff] %vm987_vm5, %v944_v32  ;;  %v939_v35 = vadd.f32 %v938_v34, %v746_v17 }
 0x1c1   : > { %v1537_v37 = vpop.f32.mrf.mxu1 }
 0x1c2   : > { %994 = vst.msk [vmem:[%s1971_s20 + $0x30] sm:$0xff] %vm987_vm5, %v939_v35  ;;  %v954_v38 = vadd.f32 %v1537_v37, %v761_v28 }
 0x1c3   : > { %v948_v39 = vpop.f32.mrf.mxu1 }
 0x1c4   : > { %997 = vst.msk [vmem:[%s1971_s20 + $0x48] sm:$0xff] %vm987_vm5, %v954_v38  ;;  %v949_v40 = vadd.f32 %v948_v39, %v756_v25 }
 0x1c5   : > { %v1540_v42 = vpop.f32.mrf.mxu1 }
 0x1c6   : > { %996 = vst.msk [vmem:[%s1971_s20 + $0x40] sm:$0xff] %vm987_vm5, %v949_v40  ;;  %v964_v43 = vadd.f32 %v1540_v42, %v771_v36 }
 0x1c7   : > { %v958_v45 = vpop.f32.mrf.mxu1 }
 0x1c8   : > { %999 = vst.msk [vmem:[%s1971_s20 + $0x58] sm:$0xff] %vm987_vm5, %v964_v43  ;;  %v959_v46 = vadd.f32 %v958_v45, %v766_v33 }
 0x1c9   : > { %v1543_v47 = vpop.f32.mrf.mxu1 }
 0x1ca   : > { %998 = vst.msk [vmem:[%s1971_s20 + $0x50] sm:$0xff] %vm987_vm5, %v959_v46  ;;  %v974_v48 = vadd.f32 %v1543_v47, %v781_v44 }
 0x1cb   : > { %v968_v50 = vpop.f32.mrf.mxu1 }
 0x1cc   : > { %1001 = vst.msk [vmem:[%s1971_s20 + $0x68] sm:$0xff] %vm987_vm5, %v974_v48  ;;  %v969_v51 = vadd.f32 %v968_v50, %v776_v41 }
 0x1cd   : > { %v1546_v53 = vpop.f32.mrf.mxu1 }
 0x1ce   : > { %1000 = vst.msk [vmem:[%s1971_s20 + $0x60] sm:$0xff] %vm987_vm5, %v969_v51  ;;  %v984_v54 = vadd.f32 %v1546_v53, %v791_v52 }
 0x1cf   : > { %v978_v55 = vpop.f32.mrf.mxu1 }
 0x1d0   : > { %1003 = vst.msk [vmem:[%s1971_s20 + $0x78] sm:$0xff] %vm987_vm5, %v984_v54  ;;  %v979_v56 = vadd.f32 %v978_v55, %v786_v49 }
 0x1d1   : > { %v1089_v58 = vpop.f32.mrf.mxu1 }
 0x1d2   : > { %1002 = vst.msk [vmem:[%s1971_s20 + $0x70] sm:$0xff] %vm987_vm5, %v979_v56  ;;  %v1090_v59 = vadd.f32 %v1089_v58, %v1010_v57 }
 0x1d3   : > { %v1091_v60 = vpop.f32.mrf.mxu1 }
 0x1d4   : > { %1620 = shalt.err (!%p1617_p3)
}
 0x1d5   : > { %s1621_s1 = scalar_lea.hbm %s2007_s15, 2048  ;;  %s1625_s18 = scalar_lea.hbm %s2083_s10, 4096 }
 0x1d6   : > { %p1622_p4 = scmp.ne.s32.totalorder %s2007_s15, %s1621_s1  ;;  %p1626_p9 = scmp.lt.s32.totalorder %s2007_s15, %s2083_s10 }
 0x1d7   : > { %p1627_p10 = scmp.lt.s32.totalorder %s1625_s18, %s1621_s1 }
 0x1d8   : > { %p1623_p7 = pnand %p1622_p4, %p1777_p5 }
 0x1d9   : > { %p1628_p11 = por %p1627_p10, %p1626_p9 }
 0x1da   : > { %p1624_p8 = pneg %p1623_p7 }
 0x1dc   : > { %p1629_p12 = pnand %p1628_p11, %p1624_p8 }
 0x1de   : > { %1632 = shalt.err (!%p1629_p12)
}
 0x1df   : > { %s1672_s2 = smov 128   ;;  %s1673_s3 = smov 8   ;;  %1094 = vst [vmem:[%s2018_s19] sm:$0xff] %v1090_v59  ;;  %v1092_v61 = vadd.f32 %v1091_v60, %v1010_v57  ;;  %v1113_v62 = vpop.permute.xlu0 %1112  ;;  %v1559_v63 = vpop.f32.mrf.mxu1 }
 0x1e0   : > { %1561 = dma.vmem_to_hbm [thread:$0]  (%p1777_p5), %s2009_s26, 2048, %s2007_s15, %s2024_s28, %s1672_s2, %s1672_s2, %s1673_s3   ;;  %v1197_v0 = vadd.f32 %v1559_v63, %v1113_v62  ;;  %v1108_v1 = vpop.permute.xlu1 %1107 }
 0x1e1   : > { %1095 = vst [vmem:[%s2018_s19 + $0x8] sm:$0xff] %v1092_v61  ;;  %s2097_s29 = sshll.u32 %s1793_s17, 4  ;;  %v1191_v2 = vpop.f32.mrf.mxu1 }
 0x1e2   : > { %s476_s20 = scalar_lea.vmem %s2085_s12, %s2097_s29  ;;  %v1192_v3 = vadd.f32 %v1191_v2, %v1108_v1 }
 0x1e3   : > { %1201 = vst.msk [vmem:[%s476_s20 + $0x8] sm:$0xff] %vm501_vm0, %v1197_v0 }
 0x1e4   : > { %1200 = vst.msk [vmem:[%s476_s20] sm:$0xff] %vm501_vm0, %v1192_v3 }
 0x1e5 PF: > { %p1567_p5 = scmp.ge.s32.totalorder %s1667_s24, 2  ;;  %s1247_s13 = sand.u32 1, %s1655_s21  }
 0x1e6   : > { %s1248_s17 = scalar_lea.sflag [#allocation3], %s1247_s13 }
 0x1e7   : > { %p1564_p13 = pnand %p1567_p5, %p1781_p6 }
 0x1e9   : > { %p1565_p0 = pneg %p1564_p13 }
 0x1eb   : > { %1650 = dma.done.wait (%p1565_p0), %s1248_s17, 2048  }
 0x1ec   : > { %1652 = vsyncadd (%p1565_p0), %s1248_s17, 4294965248  ;;  %p23_p1 = scmp.ge.s32.totalorder %s1764_s27, 4   ;;  %s2098_s21 = smov %s1659_s22 }
 0x1ed   : > { %s2099_s22 = smov %s1663_s23  ;;  %s2100_s23 = smov %s1775_s30 }
 0x1ee   : > { %s2101_s24 = smov %s1764_s27  ;;  %25 = sbr.rel (!%p23_p1) target bundleno = 8 (0x8), region = 125 }
 0x1f3   :  { %1269 = vsyncpa [#allocation3], 1 }
 0x1f4   :  { %1271 = vsyncpa [#allocation3 + $0x1], 1 }

</bundles_post_ra>
